<compile_context>
chip_gen: v7x
topology: tpu7x:2x2x1
jax: 0.10.0
libtpu: 0.0.40
codegen_flags: <defaults>
</compile_context>

<pallas_src>
import jax
import jax.numpy as jnp
from jax import lax
from jax.experimental import pallas as pl
from jax.experimental.pallas import tpu as pltpu


def channel_attention_pallas(x, fc1_w, fc2_w, *, block_bytes_target=4 * 1024 * 1024):
  """x: (B, C, H, W); fc1_w: (C//ratio, C); fc2_w: (C, C//ratio). Both convs bias-free."""
  B, C, H, W = x.shape
  Cr = fc1_w.shape[0]
  L = H * W
  Lp = ((L + 127) // 128) * 128              # lane-dense last dim
  itemsize = x.dtype.itemsize

  # NCHW -> (B, C, L), zero-pad spatial lanes up to a multiple of 128.
  x_seq = x.reshape(B, C, L)
  if Lp != L:
    x_seq = jnp.pad(x_seq, ((0, 0), (0, 0), (0, Lp - L)))

  # Batch-tile size: largest divisor of B whose (Bt, C, Lp) block stays near the
  # ~1-4 MiB sweet spot (falls back to 1 for very large images).
  per_elem_bytes = C * Lp * itemsize
  bt_cap = max(1, block_bytes_target // max(1, per_elem_bytes))
  Bt = 1
  for cand in range(min(B, bt_cap), 0, -1):
    if B % cand == 0:
      Bt = cand
      break
  grid = (B // Bt,)

  w1t = jnp.transpose(fc1_w)                 # (C, Cr)  fc1.weight.T
  w2t = jnp.transpose(fc2_w)                 # (Cr, C)  fc2.weight.T
  w_bytes = (C * Cr + Cr * C) * jnp.dtype(fc1_w.dtype).itemsize

  use_mxu = C >= 128                         # tiny-MLP path: MXU only when it pays off

  def kernel(x_ref, w1t_ref, w2t_ref, o_ref):
    f32 = jnp.float32
    x = x_ref[...]                                         # (Bt, C, Lp) native dtype

    # Global average pool: f32 accumulation confined to the reduce.
    sums = jnp.sum(x.astype(f32), axis=2)                  # (Bt, C)
    avg = sums * (1.0 / L)                                 # divide by TRUE L

    # Global max pool in native dtype; mask padded lanes if any.
    if Lp != L:
      lane = lax.broadcasted_iota(jnp.int32, (Bt, C, Lp), 2)
      if jnp.issubdtype(x_ref.dtype, jnp.floating):
        neg = jnp.array(-jnp.inf, dtype=x_ref.dtype)
      else:
        neg = jnp.array(jnp.iinfo(x_ref.dtype).min, dtype=x_ref.dtype)
      x_for_max = jnp.where(lane < L, x, neg)
    else:
      x_for_max = x
    mx = jnp.max(x_for_max, axis=2).astype(f32)            # (Bt, C)

    w1 = w1t_ref[...].astype(f32)                          # (C, Cr)
    w2 = w2t_ref[...].astype(f32)                          # (Cr, C)

    # Batched tiny MLP over both pooled branches at once: (2*Bt, C) rows.
    pooled = jnp.concatenate([avg, mx], axis=0)            # (2*Bt, C)
    if use_mxu:
      h = jnp.maximum(jnp.dot(pooled, w1, preferred_element_type=f32), 0.0)
      out = jnp.dot(h, w2, preferred_element_type=f32)     # (2*Bt, C)
    else:
      # VPU broadcast-multiply + sublane reduce (small C/Cr: cheaper than MXU).
      h = jnp.maximum(jnp.sum(pooled[:, :, None] * w1[None, :, :], axis=1), 0.0)
      out = jnp.sum(h[:, :, None] * w2[None, :, :], axis=1)

    # avg branch + max branch, exactly as in the PyTorch module (convs bias-free).
    logits = out[:Bt] + out[Bt:]                           # (Bt, C)
    attn = jax.nn.sigmoid(logits)                          # (Bt, C) f32

    # Final scale in native dtype (no f32 copy of the big tile).
    o_ref[...] = x * attn.reshape(Bt, C, 1).astype(o_ref.dtype)

  # Dtype- and temp-aware VMEM budget: double-buffered in+out blocks, weights,
  # plus the transient f32 reduce temp.  Never clamp below the real footprint;
  # cap against the chip's physical VMEM (v7x has only 64 MiB).
  io_block = Bt * C * Lp * itemsize
  f32_temp = Bt * C * Lp * 4
  footprint = 2 * 2 * io_block + 2 * w_bytes + f32_temp
  vmem_limit = max(int(footprint * 1.25) + (2 << 20), 16 << 20)
  try:
    cap = int(pltpu.get_tpu_info().vmem_capacity_bytes) * 4 // 5
    vmem_limit = max(min(vmem_limit, cap), int(footprint * 1.1))
  except Exception:
    vmem_limit = min(vmem_limit, 48 << 20)

  cost = pl.CostEstimate(
      flops=int(3 * B * C * L + 4 * B * (C * Cr + Cr * C)),
      transcendentals=int(B * C),
      bytes_accessed=int(2 * B * C * Lp * itemsize + 2 * w_bytes),
  )

  out_seq = pl.pallas_call(
      kernel,
      out_shape=jax.ShapeDtypeStruct((B, C, Lp), x.dtype),
      grid_spec=pltpu.PrefetchScalarGridSpec(
          num_scalar_prefetch=0,
          grid=grid,
          in_specs=[
              pl.BlockSpec((Bt, C, Lp), lambda b: (b, 0, 0)),
              pl.BlockSpec((C, Cr), lambda b: (0, 0)),
              pl.BlockSpec((Cr, C), lambda b: (0, 0)),
          ],
          out_specs=pl.BlockSpec((Bt, C, Lp), lambda b: (b, 0, 0)),
      ),
      compiler_params=pltpu.CompilerParams(
          dimension_semantics=("parallel",),   # batch tiles independent (megacore)
          vmem_limit_bytes=int(vmem_limit),
      ),
      cost_estimate=cost,
  )(x_seq, w1t, w2t)

  if Lp != L:
    out_seq = out_seq[:, :, :L]
  return out_seq.reshape(B, C, H, W)


def channel_attention_reference(x, fc1_w, fc2_w):
  """Pure-JAX reference matching the PyTorch module exactly."""
  avg = jnp.mean(x, axis=(2, 3), keepdims=True)            # (B, C, 1, 1)
  mx = jnp.max(x, axis=(2, 3), keepdims=True)               # (B, C, 1, 1)

  def mlp(p):
    h = jnp.maximum(jnp.einsum('rc,bcij->brij', fc1_w, p), 0.0)
    return jnp.einsum('cr,brij->bcij', fc2_w, h)

  out = mlp(avg) + mlp(mx)
  return jax.nn.sigmoid(out) * x


if __name__ == "__main__":
  B, C, H, W = 2, 8, 16, 16        # in_planes = 8
  ratio = 2
  Cr = C // ratio

  key = jax.random.PRNGKey(0)
  kx, k1, k2 = jax.random.split(key, 3)
  x = jax.random.normal(kx, (B, C, H, W), jnp.float32)
  fc1_w = jax.random.normal(k1, (Cr, C), jnp.float32) * (1.0 / (C ** 0.5))
  fc2_w = jax.random.normal(k2, (C, Cr), jnp.float32) * (1.0 / (Cr ** 0.5))

  out = jax.block_until_ready(channel_attention_pallas(x, fc1_w, fc2_w))
  assert out.shape == (B, C, H, W)
  assert bool(jnp.all(jnp.isfinite(out)))

  ref = jax.block_until_ready(channel_attention_reference(x, fc1_w, fc2_w))
  max_diff = float(jnp.max(jnp.abs(out - ref)))
  assert max_diff < 1e-4, f"mismatch vs reference: {max_diff}"

  print("KERNEL_OK")
</pallas_src>

<mosaic_0001>
module attributes {stable_mosaic.version = 11 : i64} {
  func.func @kernel(%arg0: i32, %arg1: memref<2x8x256xf32, #tpu.memory_space<vmem>>, %arg2: memref<8x4xf32, #tpu.memory_space<vmem>>, %arg3: memref<4x8xf32, #tpu.memory_space<vmem>>, %arg4: memref<2x8x256xf32, #tpu.memory_space<vmem>>) attributes {dimension_semantics = [#tpu.dimension_semantics<parallel>], iteration_bounds = array<i64: 1>, scalar_prefetch = 0 : i64, scratch_operands = 0 : i64, tpu.core_type = #tpu.core_type<tc>, window_params = [{transform_indices = @transform_0, window_bounds = array<i64: 2, 8, 256>}, {pipeline_mode = #tpu.pipeline_mode<synchronous>, transform_indices = @transform_1, window_bounds = array<i64: 8, 4>}, {pipeline_mode = #tpu.pipeline_mode<synchronous>, transform_indices = @transform_2, window_bounds = array<i64: 4, 8>}, {transform_indices = @transform_3, window_bounds = array<i64: 2, 8, 256>}]} {
    %c0 = arith.constant 0 : index
    %c0_0 = arith.constant 0 : index
    %c0_1 = arith.constant 0 : index
    %0 = vector.load %arg1[%c0, %c0_0, %c0_1] : memref<2x8x256xf32, #tpu.memory_space<vmem>>, vector<2x8x256xf32>
    %cst = arith.constant dense<0.000000e+00> : vector<2x8xf32>
    %1 = vector.multi_reduction <add>, %0, %cst [2] : vector<2x8x256xf32> to vector<2x8xf32>
    %cst_2 = arith.constant 3.906250e-03 : f32
    %2 = vector.broadcast %cst_2 : f32 to vector<2x8xf32>
    %3 = arith.mulf %1, %2 : vector<2x8xf32>
    %cst_3 = arith.constant dense<0xFF800000> : vector<2x8xf32>
    %4 = vector.multi_reduction <maximumf>, %0, %cst_3 [2] : vector<2x8x256xf32> to vector<2x8xf32>
    %c0_4 = arith.constant 0 : index
    %c0_5 = arith.constant 0 : index
    %5 = vector.load %arg2[%c0_4, %c0_5] : memref<8x4xf32, #tpu.memory_space<vmem>>, vector<8x4xf32>
    %c0_6 = arith.constant 0 : index
    %c0_7 = arith.constant 0 : index
    %6 = vector.load %arg3[%c0_6, %c0_7] : memref<4x8xf32, #tpu.memory_space<vmem>>, vector<4x8xf32>
    %7 = tpu.concatenate %3, %4 in 0 : vector<2x8xf32>, vector<2x8xf32> -> vector<4x8xf32>
    %8 = vector.shape_cast %7 : vector<4x8xf32> to vector<4x8x1xf32>
    %9 = vector.shape_cast %5 : vector<8x4xf32> to vector<1x8x4xf32>
    %10 = vector.broadcast %8 : vector<4x8x1xf32> to vector<4x8x4xf32>
    %11 = vector.broadcast %9 : vector<1x8x4xf32> to vector<4x8x4xf32>
    %12 = arith.mulf %10, %11 : vector<4x8x4xf32>
    %cst_8 = arith.constant dense<0.000000e+00> : vector<4x4xf32>
    %13 = vector.multi_reduction <add>, %12, %cst_8 [1] : vector<4x8x4xf32> to vector<4x4xf32>
    %cst_9 = arith.constant 0.000000e+00 : f32
    %14 = vector.broadcast %cst_9 : f32 to vector<4x4xf32>
    %15 = arith.maximumf %13, %14 : vector<4x4xf32>
    %16 = vector.shape_cast %15 : vector<4x4xf32> to vector<4x4x1xf32>
    %17 = vector.shape_cast %6 : vector<4x8xf32> to vector<1x4x8xf32>
    %18 = vector.broadcast %16 : vector<4x4x1xf32> to vector<4x4x8xf32>
    %19 = vector.broadcast %17 : vector<1x4x8xf32> to vector<4x4x8xf32>
    %20 = arith.mulf %18, %19 : vector<4x4x8xf32>
    %cst_10 = arith.constant dense<0.000000e+00> : vector<4x8xf32>
    %21 = vector.multi_reduction <add>, %20, %cst_10 [1] : vector<4x4x8xf32> to vector<4x8xf32>
    %22 = vector.extract_strided_slice %21 {offsets = [0, 0], sizes = [2, 8], strides = [1, 1]} : vector<4x8xf32> to vector<2x8xf32>
    %23 = vector.extract_strided_slice %21 {offsets = [2, 0], sizes = [2, 8], strides = [1, 1]} : vector<4x8xf32> to vector<2x8xf32>
    %24 = arith.addf %22, %23 : vector<2x8xf32>
    %25 = arith.negf %24 : vector<2x8xf32>
    %26 = math.exp %25 : vector<2x8xf32>
    %cst_11 = arith.constant 1.000000e+00 : f32
    %27 = vector.broadcast %cst_11 : f32 to vector<2x8xf32>
    %28 = arith.addf %27, %26 : vector<2x8xf32>
    %29 = arith.divf %27, %28 : vector<2x8xf32>
    %30 = vector.shape_cast %29 : vector<2x8xf32> to vector<2x8x1xf32>
    %31 = vector.broadcast %30 : vector<2x8x1xf32> to vector<2x8x256xf32>
    %32 = arith.mulf %0, %31 : vector<2x8x256xf32>
    %c0_12 = arith.constant 0 : index
    %c0_13 = arith.constant 0 : index
    %c0_14 = arith.constant 0 : index
    %33 = vector.load %arg4[%c0_12, %c0_13, %c0_14] : memref<2x8x256xf32, #tpu.memory_space<vmem>>, vector<2x8x256xf32>
    tpu.vector_store %arg4[%c0_12, %c0_13, %c0_14], %32 {strides = array<i32>} : memref<2x8x256xf32, #tpu.memory_space<vmem>>, vector<2x8x256xf32>,
    return
  }
  func.func @transform_0(%arg0: i32) -> (i32, i32, i32) {
    %c0_i32 = arith.constant 0 : i32
    %c0_i32_0 = arith.constant 0 : i32
    %c0_i32_1 = arith.constant 0 : i32
    return %arg0, %c0_i32, %c0_i32_0 : i32, i32, i32
  }
  func.func @transform_1(%arg0: i32) -> (i32, i32) {
    %c0_i32 = arith.constant 0 : i32
    %c0_i32_0 = arith.constant 0 : i32
    %c0_i32_1 = arith.constant 0 : i32
    return %c0_i32, %c0_i32_0 : i32, i32
  }
  func.func @transform_2(%arg0: i32) -> (i32, i32) {
    %c0_i32 = arith.constant 0 : i32
    %c0_i32_0 = arith.constant 0 : i32
    %c0_i32_1 = arith.constant 0 : i32
    return %c0_i32, %c0_i32_0 : i32, i32
  }
  func.func @transform_3(%arg0: i32) -> (i32, i32, i32) {
    %c0_i32 = arith.constant 0 : i32
    %c0_i32_0 = arith.constant 0 : i32
    %c0_i32_1 = arith.constant 0 : i32
    return %arg0, %c0_i32, %c0_i32_0 : i32, i32, i32
  }
}

</mosaic_0001>

<bundles_post_ra>
// kernel: tpu_custom_call.1
= control target key start
LH: loop header
LB: loop body
LE: loop exit
PB: predicated region body
PF: predicated region fallthrough
CT: control target
= control target key end

     0   :  { %8 = vsyncpa [#allocation3], 0  ;;  %s384_s0 = inlined_call_operand.hbm [shape: f32[2,8,256], index: 0, kind: input, shape index: {}]   ;;  %s385_s1 = inlined_call_operand.vmem [shape: f32[8,4], index: 1, kind: input, shape index: {}]   ;;  %s386_s2 = inlined_call_operand.vmem [shape: f32[4,8], index: 2, kind: input, shape index: {}]   ;;  %s387_s3 = inlined_call_operand.hbm [shape: f32[2,8,256], index: 3, kind: output, shape index: {}]  }
   0x1   :  { %9 = vsyncpa [#allocation4], 0  ;;  %s296_s12 = smov [#allocation2]   ;;  %s248_s16 = scalar_lea.hbm %s384_s0, 512 }
   0x2   :  { %s15_s13 = sshll.u32 %s296_s12, 4  ;;  %p249_p0 = scmp.ne.s32.totalorder %s384_s0, %s248_s16  ;;  %s16_s13 = int_to_ptr.vmem [resolvable:$true] %s15_s13 }
   0x3   :  { %p252_p1 = scmp.lt.u32.totalorder %s248_s16, %s384_s0 }
   0x5   :  { %p254_p2 = pnand %p252_p1, %p249_p0 }
   0x7   :  { %257 = shalt.err (!%p254_p2)
}
   0x8   :  { %s258_s21 = scalar_lea.vmem %s16_s13, 512  ;;  %p263_p4 = scmp.lt.s32.totalorder %s16_s13, %s16_s13 }
   0x9   :  { %p259_p3 = scmp.ne.s32.totalorder %s16_s13, %s258_s21  ;;  %p264_p5 = scmp.lt.s32.totalorder %s258_s21, %s258_s21 }
   0xb   :  { %p265_p6 = por %p264_p5, %p263_p4 }
   0xd   :  { %p266_p7 = pnand %p265_p6, %p259_p3 }
   0xf   :  { %269 = shalt.err (!%p266_p7)
}
  0x10   :  { %s297_s22 = smov 256   ;;  %s298_s23 = smov 16  }
  0x11   :  { %21 = dma.hbm_to_vmem [thread:$0]  %s384_s0, 512, %s16_s13, [#allocation3], %s297_s22, %s297_s22, %s298_s23  }
  0x12   :  { %292 = dma.done.wait [#allocation3], 512  }
  0x13   :  { %293 = vsyncadd [#allocation3], 4294966784  ;;  %v335_v0 = vld [vmem:[#allocation2] sm:$0xff]  ;;  %v337_v1 = vld [vmem:[#allocation2 + $0x8] sm:$0xff]  ;;  %v51_v8 = vlaneseq  ;;  %vm74_vm0 = vcmask 1043459   ;;  %vm61_vm1 = vcmask 1041409  }
  0x14   :  { %v339_v2 = vld [vmem:[#allocation2 + $0x10] sm:$0xff]  ;;  %v41_v3 = vmax.f32 %v335_v0, %v337_v1  ;;  %v33_v4 = vadd.f32 %v337_v1, %v335_v0  ;;  %v345_v5 = vld [vmem:[#allocation2 + $0x18] sm:$0xff]  ;;  %vm77_vm2 = vcmask 1041408   ;;  %v47_v33 = vld [vmem:[%s385_s1] sm:$0xff]  ;;  %vm111_vm3 = vcmask 31744  }
  0x15   :  { %v44_v6 = vmax.f32 %v339_v2, %v345_v5  ;;  %v36_v7 = vadd.f32 %v345_v5, %v339_v2  ;;  %v52_v9 = vand.u32 127, %v51_v8  ;;  %v54_v10 = vshrl.u32 %v51_v8, 7 }
  0x16   :  { %42 = vmax.xlane.f32.xlu1 %v41_v3  ;;  %34 = vadd.xlane.f32.xlu0 %v33_v4  ;;  %vm160_vm4 = vcmask 60416  }
  0x17   :  { %v55_v13 = vsub.s32 %v52_v9, %v54_v10  ;;  %v88_v19 = vsub.s32 1, %v54_v10  ;;  %v81_v23 = vsub.s32 0, %v54_v10  ;;  %v95_v29 = vsub.s32 2, %v54_v10 }
  0x18   :  { %v102_v31 = vsub.s32 3, %v54_v10 }
  0x1a   :  { %45 = vmax.xlane.f32.xlu1 %v44_v6  ;;  %37 = vadd.xlane.f32.xlu0 %v36_v7 }
  0xa3   :  { %v43_v11 = vpop.xlane.xlu1 %42  ;;  %v35_v12 = vpop.xlane.xlu0 %34 }
  0xa4   :  { %v39_v14 = vmul.f32 0.00390625, %v35_v12  ;;  %v69_v20 = vrot.slane %v43_v11, %v55_v13 }
  0xa6   :  { %v56_v21 = vrot.slane %v39_v14, %v55_v13  ;;  %v48_v14 = vld [vmem:[%s386_s2] sm:$0xf]  ;;  %s299_s2 = smov [#allocation5]  }
  0xa7   :  { %v46_v15 = vpop.xlane.xlu1 %45  ;;  %v38_v16 = vpop.xlane.xlu0 %37  ;;  %s222_s28 = sshll.u32 %s299_s2, 4  ;;  %s223_s28 = int_to_ptr.vmem [resolvable:$true] %s222_s28 }
  0xa8   :  { %v73_v17 = vrot.slane %v46_v15, %v55_v13  ;;  %v40_v18 = vmul.f32 0.00390625, %v38_v16  ;;  %s270_s29 = scalar_lea.vmem %s223_s28, 512  ;;  %p275_p9 = scmp.lt.s32.totalorder %s223_s28, %s223_s28 }
  0xa9   :  { %p271_p8 = scmp.ne.s32.totalorder %s223_s28, %s270_s29  ;;  %p276_p10 = scmp.lt.s32.totalorder %s270_s29, %s270_s29 }
  0xaa   :  { %v60_v22 = vrot.slane %v40_v18, %v55_v13  ;;  %v75_v24 = vsel %vm74_vm0, %v73_v17, %v69_v20 }
  0xab   :  { %p277_p11 = por %p276_p10, %p275_p9 }
  0xac   :  { %v62_v25 = vsel %vm61_vm1, %v60_v22, %v56_v21 }
  0xad   :  { %v78_v26 = vsel %vm77_vm2, %v62_v25, %v75_v24  ;;  %p278_p12 = pnand %p277_p11, %p271_p8 }
  0xae   :  { %v89_v27 = vrot.slane %v78_v26, %v88_v19  ;;  %v82_v28 = vrot.slane %v78_v26, %v81_v23  ;;  %v96_v30 = vrot.slane %v78_v26, %v95_v29  ;;  %v103_v32 = vrot.slane %v78_v26, %v102_v31 }
  0xb0   :  { %91 = vbcast.lane.b32.xlu1 %v89_v27, 256  ;;  %84 = vbcast.lane.b32.xlu0 %v82_v28, 256 }
  0xb4   :  { %98 = vbcast.lane.b32.xlu1 %v96_v30, 256 }
  0xb8   :  { %105 = vbcast.lane.b32.xlu1 %v103_v32, 256 }
 0x122   :  { %v92_v34 = vpop.permute.xlu1 %91  ;;  %v85_v35 = vpop.permute.xlu0 %84 }
 0x123   :  { %v108_v36 = vmul.f32 %v92_v34, %v47_v33  ;;  %v107_v37 = vmul.f32 %v85_v35, %v47_v33 }
 0x125   :  { %v119_v38 = vsel %vm111_vm3, %v108_v36, 0.0  ;;  %v112_v39 = vsel %vm111_vm3, %v107_v37, 0.0 }
 0x126   :  { %v120_v40 = vrot.slane %v119_v38, 4  ;;  %v113_v41 = vrot.slane %v112_v39, 4  ;;  %v99_v42 = vpop.permute.xlu1 %98 }
 0x127   :  { %v109_v43 = vmul.f32 %v99_v42, %v47_v33 }
 0x128   :  { %v121_v44 = vadd.f32 %v120_v40, %v119_v38  ;;  %v114_v45 = vadd.f32 %v113_v41, %v112_v39 }
 0x129   :  { %v126_v46 = vsel %vm111_vm3, %v109_v43, 0.0 }
 0x12a   :  { %v122_v47 = vrot.slane %v121_v44, 2  ;;  %v115_v48 = vrot.slane %v114_v45, 2  ;;  %v127_v49 = vrot.slane %v126_v46, 4  ;;  %v106_v50 = vpop.permute.xlu1 %105 }
 0x12b   :  { %v110_v51 = vmul.f32 %v106_v50, %v47_v33 }
 0x12c   :  { %v128_v52 = vadd.f32 %v127_v49, %v126_v46  ;;  %v123_v53 = vadd.f32 %v122_v47, %v121_v44  ;;  %v116_v54 = vadd.f32 %v115_v48, %v114_v45 }
 0x12d   :  { %v133_v55 = vsel %vm111_vm3, %v110_v51, 0.0 }
 0x12e   :  { %v129_v56 = vrot.slane %v128_v52, 2  ;;  %v134_v57 = vrot.slane %v133_v55, 4  ;;  %v124_v58 = vrot.slane %v123_v53, 1  ;;  %v117_v59 = vrot.slane %v116_v54, 1 }
 0x130   :  { %v135_v60 = vadd.f32 %v134_v57, %v133_v55  ;;  %v125_v61 = vadd.f32 %v124_v58, %v123_v53  ;;  %v118_v62 = vadd.f32 %v117_v59, %v116_v54  ;;  %v130_v63 = vadd.f32 %v129_v56, %v128_v52 }
 0x132   :  { %v136_v3 = vrot.slane %v135_v60, 2  ;;  %v141_v4 = vmax.f32 %v125_v61, 0.0  ;;  %v140_v6 = vmax.f32 %v118_v62, 0.0  ;;  %v131_v7 = vrot.slane %v130_v63, 1 }
 0x134   :  { %148 = vbcast.lane.b32.xlu1 %v141_v4, 256  ;;  %145 = vbcast.lane.b32.xlu0 %v140_v6, 256  ;;  %v132_v8 = vadd.f32 %v131_v7, %v130_v63  ;;  %v137_v9 = vadd.f32 %v136_v3, %v135_v60 }
 0x136   :  { %v142_v10 = vmax.f32 %v132_v8, 0.0  ;;  %v138_v11 = vrot.slane %v137_v9, 1 }
 0x138   :  { %151 = vbcast.lane.b32.xlu0 %v142_v10, 256  ;;  %v139_v12 = vadd.f32 %v138_v11, %v137_v9 }
 0x13a   :  { %v143_v13 = vmax.f32 %v139_v12, 0.0 }
 0x13c   :  { %154 = vbcast.lane.b32.xlu1 %v143_v13, 256 }
 0x1a6   :  { %v149_v15 = vpop.permute.xlu1 %148  ;;  %v146_v16 = vpop.permute.xlu0 %145 }
 0x1a7   :  { %v157_v17 = vmul.f32 %v149_v15, %v48_v14  ;;  %v156_v18 = vmul.f32 %v146_v16, %v48_v14 }
 0x1a9   :  { %v168_v19 = vsel %vm160_vm4, %v157_v17, 0.0  ;;  %v161_v20 = vsel %vm160_vm4, %v156_v18, 0.0 }
 0x1aa   :  { %v169_v21 = vrot.slane %v168_v19, 4  ;;  %v162_v22 = vrot.slane %v161_v20, 4  ;;  %v152_v23 = vpop.permute.xlu0 %151 }
 0x1ab   :  { %v158_v24 = vmul.f32 %v152_v23, %v48_v14 }
 0x1ac   :  { %v170_v25 = vadd.f32 %v169_v21, %v168_v19  ;;  %v163_v26 = vadd.f32 %v162_v22, %v161_v20 }
 0x1ad   :  { %v175_v27 = vsel %vm160_vm4, %v158_v24, 0.0 }
 0x1ae   :  { %v164_v28 = vrot.slane %v163_v26, 2  ;;  %v176_v29 = vrot.slane %v175_v27, 4  ;;  %v155_v30 = vpop.permute.xlu1 %154  ;;  %v171_v32 = vrot.slane %v170_v25, 2 }
 0x1af   :  { %v159_v31 = vmul.f32 %v155_v30, %v48_v14 }
 0x1b0   :  { %v165_v33 = vadd.f32 %v164_v28, %v163_v26  ;;  %v177_v34 = vadd.f32 %v176_v29, %v175_v27  ;;  %v172_v38 = vadd.f32 %v171_v32, %v170_v25 }
 0x1b1   :  { %v182_v35 = vsel %vm160_vm4, %v159_v31, 0.0 }
 0x1b2   :  { %v178_v36 = vrot.slane %v177_v34, 2  ;;  %v183_v37 = vrot.slane %v182_v35, 4  ;;  %v166_v39 = vrot.slane %v165_v33, 1  ;;  %v173_v44 = vrot.slane %v172_v38, 1 }
 0x1b4   :  { %v179_v40 = vadd.f32 %v178_v36, %v177_v34  ;;  %v184_v41 = vadd.f32 %v183_v37, %v182_v35  ;;  %v167_v45 = vadd.f32 %v166_v39, %v165_v33  ;;  %v174_v50 = vadd.f32 %v173_v44, %v172_v38 }
 0x1b6   :  { %v180_v42 = vrot.slane %v179_v40, 1  ;;  %v185_v43 = vrot.slane %v184_v41, 2 }
 0x1b8   :  { %v181_v46 = vadd.f32 %v180_v42, %v179_v40  ;;  %v186_v47 = vadd.f32 %v185_v43, %v184_v41 }
 0x1ba   :  { %v189_v48 = vadd.f32 %v181_v46, %v167_v45  ;;  %v187_v49 = vrot.slane %v186_v47, 1 }
 0x1bc   :  { %v234_v51 = vmul.f32 -1.442695, %v189_v48  ;;  %v188_v52 = vadd.f32 %v187_v49, %v186_v47 }
 0x1be   :  { %240 = vpow2.f32 %v234_v51  ;;  %v190_v53 = vadd.f32 %v188_v52, %v174_v50 }
 0x1c0   :  { %v235_v54 = vmul.f32 -1.442695, %v190_v53 }
 0x1c2   :  { %242 = vpow2.f32 %v235_v54 }
 0x1c8   :  { %v241_v55 = vpop.eup %240 }
 0x1c9   :  { %v197_v56 = vadd.f32 1.0, %v241_v55 }
 0x1cb   :  { %244 = vrcp.f32 %v197_v56 }
 0x1cc   :  { %v243_v57 = vpop.eup %242 }
 0x1cd   :  { %v198_v58 = vadd.f32 1.0, %v243_v57 }
 0x1cf   :  { %246 = vrcp.f32 %v198_v58 }
 0x1d5   :  { %v245_v59 = vpop.eup %244 }
 0x1d6   :  { %204 = vbcast.lane.b32.xlu0 %v245_v59, 256 }
 0x1d9   :  { %v247_v60 = vpop.eup %246 }
 0x1da   :  { %207 = vbcast.lane.b32.xlu1 %v247_v60, 256 }
 0x248   :  { %v205_v61 = vpop.permute.xlu0 %204 }
 0x249   :  { %v209_v62 = vmul.f32 %v205_v61, %v335_v0  ;;  %v210_v63 = vmul.f32 %v205_v61, %v337_v1 }
 0x24b   :  { %213 = vst [vmem:[#allocation5] sm:$0xff] %v209_v62  ;;  %214 = vst [vmem:[#allocation5 + $0x8] sm:$0xff] %v210_v63 }
 0x24c   :  { %v208_v3 = vpop.permute.xlu1 %207 }
 0x24d   :  { %v211_v4 = vmul.f32 %v208_v3, %v339_v2  ;;  %v212_v6 = vmul.f32 %v208_v3, %v345_v5 }
 0x24f   :  { %215 = vst [vmem:[#allocation5 + $0x10] sm:$0xff] %v211_v4  ;;  %216 = vst [vmem:[#allocation5 + $0x18] sm:$0xff] %v212_v6 }
 0x250   :  { %281 = shalt.err (!%p278_p12)
}
 0x251   :  { %s282_s5 = scalar_lea.hbm %s387_s3, 512 }
 0x252   :  { %p283_p13 = scmp.ne.s32.totalorder %s387_s3, %s282_s5  ;;  %p286_p0 = scmp.lt.u32.totalorder %s282_s5, %s387_s3 }
 0x254   :  { %p288_p1 = pnand %p286_p0, %p283_p13 }
 0x256   :  { %291 = shalt.err (!%p288_p1)
}
 0x257   :  { %228 = dma.vmem_to_hbm [thread:$0]  %s223_s28, 512, %s387_s3, [#allocation4], %s297_s22, %s297_s22, %s298_s23  }
 0x258   :  { %294 = dma.done.wait [#allocation4], 512  }
 0x259   :  { %295 = vsyncadd [#allocation4], 4294966784 }
 0x25a   :  { %232 = vsyncpa [#allocation3], 1 }
 0x25b   :  { %233 = vsyncpa [#allocation4], 1 }

</bundles_post_ra>
